<compile_context>
chip_gen: v7x
topology: tpu7x:2x2x1
jax: 0.10.0
libtpu: 0.0.40
codegen_flags: <defaults>
</compile_context>

<pallas_src>
import functools

import jax
import jax.numpy as jnp
from jax.experimental import pallas as pl
from jax.experimental.pallas import tpu as pltpu

STUDENT_TEMP = 0.1
TEACHER_TEMP = 0.04
CENTER_MOMENTUM = 0.9


def _sum_crops(x, n_crops, n_samples):
    """Elementwise sum of per-crop (n_samples, D) slices of an (n_crops*n_samples, D) slab."""
    acc = x[0:n_samples]
    for i in range(1, n_crops):
        acc = acc + x[i * n_samples:(i + 1) * n_samples]
    return acc


def _dino_loss_kernel(*refs, n_teacher, n_student, n_samples):
    """Single invocation (no grid) computes the whole loss + center EMA update.

    refs layout:
      refs[0:T]              teacher crop logits, each (N, D) in VMEM
      refs[T:T+S]            student crop logits, each (N, D) in VMEM
      refs[T+S]              current EMA center, (1, D) in VMEM
      refs[T+S+1]            loss output, (1, 1) in SMEM
      refs[T+S+2]            updated center output, (1, D) in VMEM
    """
    teacher_refs = refs[:n_teacher]
    student_refs = refs[n_teacher:n_teacher + n_student]
    center_ref = refs[n_teacher + n_student]
    loss_ref = refs[n_teacher + n_student + 1]
    center_out_ref = refs[n_teacher + n_student + 2]

    center = center_ref[...]                                                 # (1, D)

    # ---- Students: ONE batched log-softmax over all S crops ----------------
    student_all = jnp.concatenate([r[...] for r in student_refs], axis=0)    # (S*N, D)
    ss = student_all * jnp.float32(1.0 / STUDENT_TEMP)
    ss = ss - jnp.max(ss, axis=-1, keepdims=True)
    s_lsm = ss - jnp.log(jnp.sum(jnp.exp(ss), axis=-1, keepdims=True))       # (S*N, D)
    sum_lsm = _sum_crops(s_lsm, n_student, n_samples)                        # (N, D)

    # ---- Teachers: ONE batched softmax over all T crops ---------------------
    teacher_all = jnp.concatenate([r[...] for r in teacher_refs], axis=0)    # (T*N, D)
    tt = (teacher_all - center) * jnp.float32(1.0 / TEACHER_TEMP)
    tt = tt - jnp.max(tt, axis=-1, keepdims=True)
    te = jnp.exp(tt)
    # exact reciprocal (approx=False) keeps numerics within 1e-5 of the ref
    t_sm = te * pl.reciprocal(jnp.sum(te, axis=-1, keepdims=True))           # (T*N, D)
    t_sm_sum = _sum_crops(t_sm, n_teacher, n_samples)                        # (N, D)

    # ---- Factored cross-entropy ---------------------------------------------
    # sum_t sum_{s != t} sum_{n,d}(-t_sm[t] * s_lsm[s])
    #   = -[ sum_{n,d}( (sum_t t_sm[t]) * sum_lsm )
    #        - sum_{n,d}( sum_{t < min(T,S)} t_sm[t] * s_lsm[t] ) ]
    # Accumulate elementwise in a (N, D) vreg accumulator; reduce to scalar ONCE.
    n_diag = min(n_teacher, n_student)
    acc_nd = t_sm_sum * sum_lsm
    for t_ix in range(n_diag):                       # static unroll, T tiny
        sl = slice(t_ix * n_samples, (t_ix + 1) * n_samples)
        acc_nd = acc_nd - t_sm[sl] * s_lsm[sl]
    loss_raw = jnp.sum(acc_nd)                       # single full XLU reduce

    n_loss_terms = n_teacher * n_student - n_diag
    loss_ref[0, 0] = -loss_raw * jnp.float32(1.0 / (n_samples * n_loss_terms))

    # ---- Center EMA from raw teacher logits ----------------------------------
    batch_center = jnp.sum(teacher_all, axis=0, keepdims=True) * jnp.float32(
        1.0 / (n_teacher * n_samples))                                       # (1, D)
    center_out_ref[...] = (center * jnp.float32(CENTER_MOMENTUM)
                           + batch_center * jnp.float32(1.0 - CENTER_MOMENTUM))


@jax.jit
def dino_loss(student_output, teacher_output, center):
    """Pallas implementation of Loss.forward (+ the center EMA update).

    student_output / teacher_output : tuples of (n_samples, out_dim) arrays.
    Returns (scalar loss, new center of shape (1, out_dim)).
    """
    student = tuple(s.astype(jnp.float32) for s in student_output)
    teacher = tuple(t.astype(jnp.float32) for t in teacher_output)
    center = center.astype(jnp.float32)                                      # (1, D)

    S = len(student)
    T = len(teacher)
    N, D = student[0].shape

    kernel = functools.partial(
        _dino_loss_kernel, n_teacher=T, n_student=S, n_samples=N)

    vmem_specs = [pl.BlockSpec(memory_space=pltpu.MemorySpace.VMEM)
                  for _ in range(T + S + 1)]

    loss, new_center = pl.pallas_call(
        kernel,
        out_shape=(jax.ShapeDtypeStruct((1, 1), jnp.float32),
                   jax.ShapeDtypeStruct((1, D), jnp.float32)),
        in_specs=vmem_specs,                                  # T teachers, S students, center
        out_specs=(pl.BlockSpec(memory_space=pltpu.MemorySpace.SMEM),
                   pl.BlockSpec(memory_space=pltpu.MemorySpace.VMEM)),
        # center (input index T+S) aliases the updated-center output (index 1),
        # matching the module's in-place buffer update.
        input_output_aliases={T + S: 1},
    )(*teacher, *student, center)

    return loss[0, 0], new_center


def reference_loss(student_output, teacher_output, center):
    """Pure-JAX reference mirroring the PyTorch module exactly."""
    student_sm = [jax.nn.log_softmax(s / STUDENT_TEMP, axis=-1)
                  for s in student_output]
    teacher_sm = [jax.nn.softmax((t - center) / TEACHER_TEMP, axis=-1)
                  for t in teacher_output]
    total = 0.0
    n_terms = 0
    for t_ix, t in enumerate(teacher_sm):
        for s_ix, s in enumerate(student_sm):
            if t_ix == s_ix:
                continue
            total = total + jnp.mean(jnp.sum(-t * s, axis=-1))
            n_terms += 1
    total = total / n_terms
    batch_center = jnp.concatenate(teacher_output).mean(axis=0, keepdims=True)
    new_center = center * CENTER_MOMENTUM + batch_center * (1.0 - CENTER_MOMENTUM)
    return total, new_center


if __name__ == "__main__":
    # Small shapes consistent with the module: 4 student crops, 2 teacher
    # (global) crops, 8 samples each, out_dim = 128.
    S_CROPS, T_CROPS, N, D = 4, 2, 8, 128

    key = jax.random.PRNGKey(0)
    keys = jax.random.split(key, S_CROPS + T_CROPS)
    student_output = tuple(
        jax.random.normal(keys[i], (N, D), dtype=jnp.float32)
        for i in range(S_CROPS))
    teacher_output = tuple(
        jax.random.normal(keys[S_CROPS + i], (N, D), dtype=jnp.float32)
        for i in range(T_CROPS))

    # Buffer `center` initialized to zeros, as in the module's __init__.
    center = jnp.zeros((1, D), dtype=jnp.float32)

    # References first (step 1 with zero center, step 2 with non-zero EMA center).
    ref_loss1, ref_center1 = reference_loss(student_output, teacher_output, center)
    ref_loss2, ref_center2 = reference_loss(student_output, teacher_output, ref_center1)

    loss1, center1 = dino_loss(student_output, teacher_output, center)
    loss1 = jax.block_until_ready(loss1)
    center1 = jax.block_until_ready(center1)

    loss2, center2 = dino_loss(student_output, teacher_output, center1)
    loss2 = jax.block_until_ready(loss2)
    center2 = jax.block_until_ready(center2)

    assert jnp.allclose(loss1, ref_loss1, rtol=1e-5, atol=1e-5), (loss1, ref_loss1)
    assert jnp.allclose(center1, ref_center1, rtol=1e-5, atol=1e-5)
    assert jnp.allclose(loss2, ref_loss2, rtol=1e-5, atol=1e-5), (loss2, ref_loss2)
    assert jnp.allclose(center2, ref_center2, rtol=1e-5, atol=1e-5)

    print("KERNEL_OK")
</pallas_src>

<mosaic_0001>
module attributes {stable_mosaic.version = 11 : i64} {
  func.func @_dino_loss_kernel(%arg0: memref<8x128xf32, #tpu.memory_space<vmem>>, %arg1: memref<8x128xf32, #tpu.memory_space<vmem>>, %arg2: memref<8x128xf32, #tpu.memory_space<vmem>>, %arg3: memref<8x128xf32, #tpu.memory_space<vmem>>, %arg4: memref<8x128xf32, #tpu.memory_space<vmem>>, %arg5: memref<8x128xf32, #tpu.memory_space<vmem>>, %arg6: memref<1x128xf32, #tpu.memory_space<vmem>>, %arg7: memref<1x1xf32, #tpu.memory_space<smem>>, %arg8: memref<1x128xf32, #tpu.memory_space<vmem>>) attributes {dimension_semantics = [], scalar_prefetch = 0 : i64, scratch_operands = 0 : i64, tpu.core_type = #tpu.core_type<tc>} {
    %c0 = arith.constant 0 : index
    %c0_0 = arith.constant 0 : index
    %0 = vector.load %arg6[%c0, %c0_0] : memref<1x128xf32, #tpu.memory_space<vmem>>, vector<1x128xf32>
    %c0_1 = arith.constant 0 : index
    %c0_2 = arith.constant 0 : index
    %1 = vector.load %arg2[%c0_1, %c0_2] : memref<8x128xf32, #tpu.memory_space<vmem>>, vector<8x128xf32>
    %c0_3 = arith.constant 0 : index
    %c0_4 = arith.constant 0 : index
    %2 = vector.load %arg3[%c0_3, %c0_4] : memref<8x128xf32, #tpu.memory_space<vmem>>, vector<8x128xf32>
    %c0_5 = arith.constant 0 : index
    %c0_6 = arith.constant 0 : index
    %3 = vector.load %arg4[%c0_5, %c0_6] : memref<8x128xf32, #tpu.memory_space<vmem>>, vector<8x128xf32>
    %c0_7 = arith.constant 0 : index
    %c0_8 = arith.constant 0 : index
    %4 = vector.load %arg5[%c0_7, %c0_8] : memref<8x128xf32, #tpu.memory_space<vmem>>, vector<8x128xf32>
    %5 = tpu.concatenate %1, %2, %3, %4 in 0 : vector<8x128xf32>, vector<8x128xf32>, vector<8x128xf32>, vector<8x128xf32> -> vector<32x128xf32>
    %cst = arith.constant 1.000000e+01 : f32
    %6 = vector.broadcast %cst : f32 to vector<32x128xf32>
    %7 = arith.mulf %5, %6 : vector<32x128xf32>
    %cst_9 = arith.constant dense<0xFF800000> : vector<32xf32>
    %8 = vector.multi_reduction <maximumf>, %7, %cst_9 [1] : vector<32x128xf32> to vector<32xf32>
    %9 = vector.shape_cast %8 : vector<32xf32> to vector<32x1xf32>
    %10 = vector.broadcast %9 : vector<32x1xf32> to vector<32x128xf32>
    %11 = arith.subf %7, %10 : vector<32x128xf32>
    %12 = math.exp %11 : vector<32x128xf32>
    %cst_10 = arith.constant dense<0.000000e+00> : vector<32xf32>
    %13 = vector.multi_reduction <add>, %12, %cst_10 [1] : vector<32x128xf32> to vector<32xf32>
    %14 = vector.shape_cast %13 : vector<32xf32> to vector<32x1xf32>
    %15 = math.log %14 : vector<32x1xf32>
    %16 = vector.broadcast %15 : vector<32x1xf32> to vector<32x128xf32>
    %17 = arith.subf %11, %16 : vector<32x128xf32>
    %18 = vector.extract_strided_slice %17 {offsets = [0, 0], sizes = [8, 128], strides = [1, 1]} : vector<32x128xf32> to vector<8x128xf32>
    %19 = vector.extract_strided_slice %17 {offsets = [8, 0], sizes = [8, 128], strides = [1, 1]} : vector<32x128xf32> to vector<8x128xf32>
    %20 = arith.addf %18, %19 : vector<8x128xf32>
    %21 = vector.extract_strided_slice %17 {offsets = [16, 0], sizes = [8, 128], strides = [1, 1]} : vector<32x128xf32> to vector<8x128xf32>
    %22 = arith.addf %20, %21 : vector<8x128xf32>
    %23 = vector.extract_strided_slice %17 {offsets = [24, 0], sizes = [8, 128], strides = [1, 1]} : vector<32x128xf32> to vector<8x128xf32>
    %24 = arith.addf %22, %23 : vector<8x128xf32>
    %c0_11 = arith.constant 0 : index
    %c0_12 = arith.constant 0 : index
    %25 = vector.load %arg0[%c0_11, %c0_12] : memref<8x128xf32, #tpu.memory_space<vmem>>, vector<8x128xf32>
    %c0_13 = arith.constant 0 : index
    %c0_14 = arith.constant 0 : index
    %26 = vector.load %arg1[%c0_13, %c0_14] : memref<8x128xf32, #tpu.memory_space<vmem>>, vector<8x128xf32>
    %27 = tpu.concatenate %25, %26 in 0 : vector<8x128xf32>, vector<8x128xf32> -> vector<16x128xf32>
    %28 = vector.broadcast %0 : vector<1x128xf32> to vector<16x128xf32>
    %29 = arith.subf %27, %28 : vector<16x128xf32>
    %cst_15 = arith.constant 2.500000e+01 : f32
    %30 = vector.broadcast %cst_15 : f32 to vector<16x128xf32>
    %31 = arith.mulf %29, %30 : vector<16x128xf32>
    %cst_16 = arith.constant dense<0xFF800000> : vector<16xf32>
    %32 = vector.multi_reduction <maximumf>, %31, %cst_16 [1] : vector<16x128xf32> to vector<16xf32>
    %33 = vector.shape_cast %32 : vector<16xf32> to vector<16x1xf32>
    %34 = vector.broadcast %33 : vector<16x1xf32> to vector<16x128xf32>
    %35 = arith.subf %31, %34 : vector<16x128xf32>
    %36 = math.exp %35 : vector<16x128xf32>
    %cst_17 = arith.constant dense<0.000000e+00> : vector<16xf32>
    %37 = vector.multi_reduction <add>, %36, %cst_17 [1] : vector<16x128xf32> to vector<16xf32>
    %38 = vector.shape_cast %37 : vector<16xf32> to vector<16x1xf32>
    %39 = tpu.reciprocal %38 : vector<16x1xf32> -> vector<16x1xf32>
    %40 = vector.broadcast %39 : vector<16x1xf32> to vector<16x128xf32>
    %41 = arith.mulf %36, %40 : vector<16x128xf32>
    %42 = vector.extract_strided_slice %41 {offsets = [0, 0], sizes = [8, 128], strides = [1, 1]} : vector<16x128xf32> to vector<8x128xf32>
    %43 = vector.extract_strided_slice %41 {offsets = [8, 0], sizes = [8, 128], strides = [1, 1]} : vector<16x128xf32> to vector<8x128xf32>
    %44 = arith.addf %42, %43 : vector<8x128xf32>
    %45 = arith.mulf %44, %24 : vector<8x128xf32>
    %46 = vector.extract_strided_slice %41 {offsets = [0, 0], sizes = [8, 128], strides = [1, 1]} : vector<16x128xf32> to vector<8x128xf32>
    %47 = vector.extract_strided_slice %17 {offsets = [0, 0], sizes = [8, 128], strides = [1, 1]} : vector<32x128xf32> to vector<8x128xf32>
    %48 = arith.mulf %46, %47 : vector<8x128xf32>
    %49 = arith.subf %45, %48 : vector<8x128xf32>
    %50 = vector.extract_strided_slice %41 {offsets = [8, 0], sizes = [8, 128], strides = [1, 1]} : vector<16x128xf32> to vector<8x128xf32>
    %51 = vector.extract_strided_slice %17 {offsets = [8, 0], sizes = [8, 128], strides = [1, 1]} : vector<32x128xf32> to vector<8x128xf32>
    %52 = arith.mulf %50, %51 : vector<8x128xf32>
    %53 = arith.subf %49, %52 : vector<8x128xf32>
    %54 = vector.shape_cast %53 : vector<8x128xf32> to vector<1x8x128xf32>
    %cst_18 = arith.constant dense<0.000000e+00> : vector<1xf32>
    %55 = vector.multi_reduction <add>, %54, %cst_18 [1, 2] : vector<1x8x128xf32> to vector<1xf32>
    %56 = vector.shape_cast %55 : vector<1xf32> to vector<1x1x1xf32>
    %57 = vector.extract %56[0, 0, 0] : f32 from vector<1x1x1xf32>
    %cst_19 = arith.constant 0.000000e+00 : f32
    %58 = arith.subf %cst_19, %57 : f32
    %cst_20 = arith.constant 0.020833334 : f32
    %59 = arith.mulf %58, %cst_20 : f32
    %c0_21 = arith.constant 0 : index
    %c0_22 = arith.constant 0 : index
    %60 = memref.load %arg7[%c0_21, %c0_22] : memref<1x1xf32, #tpu.memory_space<smem>>
    memref.store %59, %arg7[%c0_21, %c0_22] : memref<1x1xf32, #tpu.memory_space<smem>>
    %cst_23 = arith.constant dense<0.000000e+00> : vector<128xf32>
    %61 = vector.multi_reduction <add>, %27, %cst_23 [0] : vector<16x128xf32> to vector<128xf32>
    %62 = vector.shape_cast %61 : vector<128xf32> to vector<1x128xf32>
    %cst_24 = arith.constant 6.250000e-02 : f32
    %63 = vector.broadcast %cst_24 : f32 to vector<1x128xf32>
    %64 = arith.mulf %62, %63 : vector<1x128xf32>
    %cst_25 = arith.constant 0.899999976 : f32
    %65 = vector.broadcast %cst_25 : f32 to vector<1x128xf32>
    %66 = arith.mulf %0, %65 : vector<1x128xf32>
    %cst_26 = arith.constant 1.000000e-01 : f32
    %67 = vector.broadcast %cst_26 : f32 to vector<1x128xf32>
    %68 = arith.mulf %64, %67 : vector<1x128xf32>
    %69 = arith.addf %66, %68 : vector<1x128xf32>
    %c0_27 = arith.constant 0 : index
    %c0_28 = arith.constant 0 : index
    %70 = vector.load %arg8[%c0_27, %c0_28] : memref<1x128xf32, #tpu.memory_space<vmem>>, vector<1x128xf32>
    tpu.vector_store %arg8[%c0_27, %c0_28], %69 {strides = array<i32>} : memref<1x128xf32, #tpu.memory_space<vmem>>, vector<1x128xf32>,
    return
  }
}

</mosaic_0001>

<bundles_post_ra>
// kernel: dino_loss.1
= control target key start
LH: loop header
LB: loop body
LE: loop exit
PB: predicated region body
PF: predicated region fallthrough
CT: control target
= control target key end

     0   :  { %14 = vsyncpa [#allocation3], 0  ;;  %s468_s0 = inlined_call_operand.vmem [shape: f32[8,128], index: 0, kind: input, shape index: {}]   ;;  %s469_s1 = inlined_call_operand.hbm [shape: f32[8,128], index: 1, kind: input, shape index: {}]   ;;  %s470_s2 = inlined_call_operand.vmem [shape: f32[8,128], index: 2, kind: input, shape index: {}]   ;;  %s471_s3 = inlined_call_operand.hbm [shape: f32[8,128], index: 3, kind: input, shape index: {}]   ;;  %s472_s4 = inlined_call_operand.hbm [shape: f32[8,128], index: 4, kind: input, shape index: {}]   ;;  %s473_s5 = inlined_call_operand.hbm [shape: f32[8,128], index: 5, kind: input, shape index: {}]   ;;  %s474_s6 = inlined_call_operand.vmem [shape: f32[1,128], index: 6, kind: input, shape index: {}, may-alias: {6,8}]   ;;  %s475_s7 = inlined_call_operand.hbm [shape: f32[1,1], index: 7, kind: output, shape index: {0}]   ;;  %s476_s8 = inlined_call_operand.vmem [shape: f32[1,128], index: 8, kind: output, shape index: {1}, may-alias: {6,8}]  }
   0x1   :  { %15 = vsyncpa [#allocation6], 0 }
   0x2   :  { %16 = vsyncpa [#allocation9], 0 }
   0x3   :  { %17 = vsyncpa [#allocation4], 0  ;;  %s346_s27 = smov [#allocation5]   ;;  %s347_s29 = smov [#allocation2]  }
   0x4   :  { %s38_s28 = sshll.u32 %s346_s27, 4  ;;  %s26_s30 = sshll.u32 %s347_s29, 4  ;;  %s39_s28 = int_to_ptr.vmem [resolvable:$true] %s38_s28  ;;  %s27_s30 = int_to_ptr.vmem [resolvable:$true] %s26_s30 }
   0x5   :  { %s240_s11 = scalar_lea.hbm %s471_s3, 128 }
   0x6   :  { %p241_p0 = scmp.ne.s32.totalorder %s471_s3, %s240_s11  ;;  %p244_p1 = scmp.lt.u32.totalorder %s240_s11, %s471_s3 }
   0x8   :  { %p246_p2 = pnand %p244_p1, %p241_p0 }
   0xa   :  { %249 = shalt.err (!%p246_p2)
}
   0xb   :  { %s250_s16 = scalar_lea.vmem %s39_s28, 128  ;;  %p255_p4 = scmp.lt.s32.totalorder %s39_s28, %s39_s28 }
   0xc   :  { %p251_p3 = scmp.ne.s32.totalorder %s39_s28, %s250_s16  ;;  %p256_p5 = scmp.lt.s32.totalorder %s250_s16, %s250_s16 }
   0xe   :  { %p257_p6 = por %p256_p5, %p255_p4 }
  0x10   :  { %p258_p7 = pnand %p257_p6, %p251_p3 }
  0x12   :  { %261 = shalt.err (!%p258_p7)
}
  0x13   :  { %41 = dma.hbm_to_vmem [thread:$0]  %s471_s3, 128, %s39_s28, [#allocation6]  }
  0x14   :  { %s262_s21 = scalar_lea.hbm %s469_s1, 128 }
  0x15   :  { %p263_p8 = scmp.ne.s32.totalorder %s469_s1, %s262_s21  ;;  %p266_p9 = scmp.lt.u32.totalorder %s262_s21, %s469_s1 }
  0x17   :  { %p268_p10 = pnand %p266_p9, %p263_p8 }
  0x19   :  { %271 = shalt.err (!%p268_p10)
}
  0x1a   :  { %s272_s26 = scalar_lea.vmem %s27_s30, 128  ;;  %p277_p12 = scmp.lt.s32.totalorder %s27_s30, %s27_s30 }
  0x1b   :  { %p273_p11 = scmp.ne.s32.totalorder %s27_s30, %s272_s26  ;;  %p278_p13 = scmp.lt.s32.totalorder %s272_s26, %s272_s26 }
  0x1d   :  { %p279_p0 = por %p278_p13, %p277_p12 }
  0x1f   :  { %p280_p1 = pnand %p279_p0, %p273_p11 }
  0x21   :  { %283 = shalt.err (!%p280_p1)
}
  0x22   :  { %29 = dma.hbm_to_vmem [thread:$0]  %s469_s1, 128, %s27_s30, [#allocation3]  }
  0x23   :  { %s348_s28 = smov [#allocation7]   ;;  %s349_s9 = smov [#allocation8]  }
  0x24   :  { %s48_s29 = sshll.u32 %s348_s28, 4  ;;  %s58_s10 = sshll.u32 %s349_s9, 4  ;;  %s49_s29 = int_to_ptr.vmem [resolvable:$true] %s48_s29  ;;  %s59_s10 = int_to_ptr.vmem [resolvable:$true] %s58_s10 }
  0x25   :  { %s284_s13 = scalar_lea.hbm %s472_s4, 128 }
  0x26   :  { %p285_p2 = scmp.ne.s32.totalorder %s472_s4, %s284_s13  ;;  %p288_p3 = scmp.lt.u32.totalorder %s284_s13, %s472_s4 }
  0x28   :  { %p290_p4 = pnand %p288_p3, %p285_p2 }
  0x2a   :  { %293 = shalt.err (!%p290_p4)
}
  0x2b   :  { %s294_s1 = scalar_lea.vmem %s49_s29, 128  ;;  %p299_p6 = scmp.lt.s32.totalorder %s49_s29, %s49_s29 }
  0x2c   :  { %p295_p5 = scmp.ne.s32.totalorder %s49_s29, %s294_s1  ;;  %p300_p7 = scmp.lt.s32.totalorder %s294_s1, %s294_s1 }
  0x2e   :  { %p301_p8 = por %p300_p7, %p299_p6 }
  0x30   :  { %p302_p9 = pnand %p301_p8, %p295_p5 }
  0x32   :  { %305 = shalt.err (!%p302_p9)
}
  0x33   :  { %51 = dma.hbm_to_vmem [thread:$0]  %s472_s4, 128, %s49_s29, [#allocation6]  }
  0x34   :  { %s306_s21 = scalar_lea.hbm %s473_s5, 128 }
  0x35   :  { %p307_p10 = scmp.ne.s32.totalorder %s473_s5, %s306_s21  ;;  %p310_p11 = scmp.lt.u32.totalorder %s306_s21, %s473_s5 }
  0x37   :  { %p312_p12 = pnand %p310_p11, %p307_p10 }
  0x39   :  { %315 = shalt.err (!%p312_p12)
}
  0x3a   :  { %s316_s26 = scalar_lea.vmem %s59_s10, 128  ;;  %p321_p0 = scmp.lt.s32.totalorder %s59_s10, %s59_s10 }
  0x3b   :  { %p317_p13 = scmp.ne.s32.totalorder %s59_s10, %s316_s26  ;;  %p322_p1 = scmp.lt.s32.totalorder %s316_s26, %s316_s26 }
  0x3d   :  { %p323_p2 = por %p322_p1, %p321_p0 }
  0x3f   :  { %p324_p3 = pnand %p323_p2, %p317_p13 }
  0x41   :  { %327 = shalt.err (!%p324_p3)
}
  0x42   :  { %61 = dma.hbm_to_vmem [thread:$0]  %s473_s5, 128, %s59_s10, [#allocation9]  }
  0x43   :  { %338 = dma.done.wait [#allocation3], 128  }
  0x44   :  { %339 = vsyncadd [#allocation3], 4294967168 }
  0x45   :  { %340 = dma.done.wait [#allocation6], 256  }
  0x46   :  { %341 = vsyncadd [#allocation6], 4294967040 }
  0x47   :  { %342 = dma.done.wait [#allocation9], 128  }
  0x48   :  { %343 = vsyncadd [#allocation9], 4294967168  ;;  %v131_v0 = vlaneseq  ;;  %v77_v3 = vld [vmem:[%s470_s2] sm:$0xff]  ;;  %v79_v4 = vld [vmem:[#allocation7] sm:$0xff]  ;;  %s328_s14 = scalar_lea.hbm %s475_s7, 16 }
  0x49   :  { %v78_v5 = vld [vmem:[#allocation5] sm:$0xff]  ;;  %v81_v6 = vmul.f32 10.0, %v77_v3  ;;  %v83_v7 = vmul.f32 10.0, %v79_v4  ;;  %v80_v8 = vld [vmem:[#allocation8] sm:$0xff]  ;;  %v76_v9 = vld [vmem:[%s474_s6] sm:$0x1]  ;;  %p329_p4 = scmp.ne.s32.totalorder %s475_s7, %s328_s14  ;;  %p332_p5 = scmp.lt.u32.totalorder %s328_s14, %s475_s7 }
  0x4a   :  { %v132_v1 = vshrl.u32 %v131_v0, 7  ;;  %v128_v10 = vld [vmem:[%s468_s0] sm:$0xff]  ;;  %v82_v13 = vmul.f32 10.0, %v78_v5  ;;  %v84_v14 = vmul.f32 10.0, %v80_v8  ;;  %v185_v26 = vmul.f32 0.9, %v76_v9 }
  0x4b   :  { %v129_v12 = vld [vmem:[#allocation2] sm:$0xff]  ;;  %85 = vmax.xlane.f32.xlu0 %v81_v6  ;;  %89 = vmax.xlane.f32.xlu1 %v83_v7  ;;  %p334_p6 = pnand %p332_p5, %p329_p4 }
  0x4c   :  { %v133_v2 = vsub.s32 0, %v132_v1  ;;  %v177_v15 = vadd.f32 %v129_v12, %v128_v10 }
  0x4e   :  { %v134_v11 = vrot.slane %v76_v9, %v133_v2  ;;  %v178_v18 = vrot.slane %v177_v15, 4 }
  0x4f   :  { %87 = vmax.xlane.f32.xlu0 %v82_v13  ;;  %91 = vmax.xlane.f32.xlu1 %v84_v14 }
  0x50   :  { %v136_v16 = vsub.f32 %v128_v10, %v134_v11  ;;  %v137_v17 = vsub.f32 %v129_v12, %v134_v11  ;;  %v179_v21 = vadd.f32 %v178_v18, %v177_v15 }
  0x52   :  { %v138_v19 = vmul.f32 25.0, %v136_v16  ;;  %v139_v20 = vmul.f32 25.0, %v137_v17  ;;  %v180_v22 = vrot.slane %v179_v21, 2 }
  0x54   :  { %140 = vmax.xlane.f32.xlu0 %v138_v19  ;;  %v181_v23 = vadd.f32 %v180_v22, %v179_v21  ;;  %142 = vmax.xlane.f32.xlu1 %v139_v20 }
  0x56   :  { %v182_v24 = vrot.slane %v181_v23, 1 }
  0x58   :  { %v183_v25 = vadd.f32 %v182_v24, %v181_v23 }
  0x5a   :  { %v184_v27 = vmul.f32 0.0625, %v183_v25 }
  0x5c   :  { %v186_v28 = vmul.f32 0.1, %v184_v27 }
  0x5e   :  { %v187_v29 = vadd.f32 %v186_v28, %v185_v26 }
  0x60   :  { %188 = vst [vmem:[%s476_s8] sm:$0x1] %v187_v29 }
  0xd8   :  { %v86_v30 = vpop.xlane.xlu0 %85  ;;  %v90_v31 = vpop.xlane.xlu1 %89 }
  0xd9   :  { %v93_v32 = vsub.f32 %v81_v6, %v86_v30  ;;  %v95_v33 = vsub.f32 %v83_v7, %v90_v31 }
  0xdb   :  { %v97_v34 = vmul.f32 1.442695, %v93_v32  ;;  %v101_v35 = vmul.f32 1.442695, %v95_v33 }
  0xdc   :  { %v88_v36 = vpop.xlane.xlu0 %87  ;;  %v92_v37 = vpop.xlane.xlu1 %91 }
  0xdd   :  { %216 = vpow2.f32 %v97_v34  ;;  %v94_v38 = vsub.f32 %v82_v13, %v88_v36  ;;  %v96_v39 = vsub.f32 %v84_v14, %v92_v37 }
  0xde   :  { %218 = vpow2.f32 %v101_v35 }
  0xdf   :  { %v99_v40 = vmul.f32 1.442695, %v94_v38  ;;  %v103_v41 = vmul.f32 1.442695, %v96_v39 }
  0xe1   :  { %v141_v42 = vpop.xlane.xlu0 %140  ;;  %v143_v43 = vpop.xlane.xlu1 %142  ;;  %220 = vpow2.f32 %v99_v40 }
  0xe2   :  { %v144_v44 = vsub.f32 %v138_v19, %v141_v42  ;;  %v145_v45 = vsub.f32 %v139_v20, %v143_v43  ;;  %222 = vpow2.f32 %v103_v41 }
  0xe4   :  { %v146_v46 = vmul.f32 1.442695, %v144_v44  ;;  %v148_v47 = vmul.f32 1.442695, %v145_v45 }
  0xe6   :  { %224 = vpow2.f32 %v146_v46 }
  0xe7   :  { %v217_v48 = vpop.eup %216  ;;  %226 = vpow2.f32 %v148_v47 }
  0xe8   :  { %105 = vadd.xlane.f32.xlu0 %v217_v48  ;;  %v219_v49 = vpop.eup %218 }
  0xeb   :  { %v221_v50 = vpop.eup %220 }
  0xec   :  { %107 = vadd.xlane.f32.xlu1 %v221_v50  ;;  %109 = vadd.xlane.f32.xlu0 %v219_v49  ;;  %v223_v51 = vpop.eup %222 }
  0xf0   :  { %v225_v52 = vpop.eup %224  ;;  %111 = vadd.xlane.f32.xlu1 %v223_v51 }
  0xf1   :  { %150 = vadd.xlane.f32.xlu0 %v225_v52  ;;  %v227_v53 = vpop.eup %226 }
  0xf4   :  { %152 = vadd.xlane.f32.xlu1 %v227_v53 }
 0x175   :  { %v106_v54 = vpop.xlane.xlu0 %105 }
 0x176   :  { %228 = vlog2.f32 %v106_v54 }
 0x179   :  { %v108_v55 = vpop.xlane.xlu1 %107  ;;  %v110_v56 = vpop.xlane.xlu0 %109 }
 0x17a   :  { %230 = vlog2.f32 %v108_v55 }
 0x17b   :  { %232 = vlog2.f32 %v110_v56 }
 0x17d   :  { %v112_v57 = vpop.xlane.xlu1 %111 }
 0x17e   :  { %v151_v58 = vpop.xlane.xlu0 %150  ;;  %234 = vlog2.f32 %v112_v57 }
 0x17f   :  { %236 = vrcp.f32 %v151_v58 }
 0x180   :  { %v229_v59 = vpop.eup %228 }
 0x181   :  { %v153_v60 = vpop.xlane.xlu1 %152  ;;  %v114_v61 = vmul.f32 0.6931472, %v229_v59 }
 0x182   :  { %238 = vrcp.f32 %v153_v60 }
 0x183   :  { %v121_v2 = vsub.f32 %v93_v32, %v114_v61 }
 0x184   :  { %v231_v62 = vpop.eup %230 }
 0x185   :  { %v233_v63 = vpop.eup %232  ;;  %v116_v0 = vmul.f32 0.6931472, %v231_v62 }
 0x186   :  { %v118_v1 = vmul.f32 0.6931472, %v233_v63 }
 0x187   :  { %v122_v3 = vsub.f32 %v94_v38, %v116_v0 }
 0x188   :  { %v235_v4 = vpop.eup %234  ;;  %v123_v6 = vsub.f32 %v95_v33, %v118_v1 }
 0x189   :  { %v125_v5 = vadd.f32 %v122_v3, %v121_v2  ;;  %v120_v7 = vmul.f32 0.6931472, %v235_v4  ;;  %v237_v8 = vpop.eup %236 }
 0x18a   :  { %v156_v12 = vmul.f32 %v237_v8, %v225_v52 }
 0x18b   :  { %v126_v9 = vadd.f32 %v125_v5, %v123_v6  ;;  %v124_v10 = vsub.f32 %v96_v39, %v120_v7 }
 0x18c   :  { %v239_v11 = vpop.eup %238  ;;  %v160_v17 = vmul.f32 %v156_v12, %v121_v2 }
 0x18d   :  { %v157_v13 = vmul.f32 %v239_v11, %v227_v53  ;;  %v127_v14 = vadd.f32 %v126_v9, %v124_v10 }
 0x18f   :  { %v158_v15 = vadd.f32 %v157_v13, %v156_v12  ;;  %v162_v19 = vmul.f32 %v157_v13, %v122_v3 }
 0x191   :  { %v159_v16 = vmul.f32 %v158_v15, %v127_v14 }
 0x193   :  { %v161_v18 = vsub.f32 %v159_v16, %v160_v17 }
 0x195   :  { %v163_v20 = vsub.f32 %v161_v18, %v162_v19 }
 0x197   :  { %164 = vadd.xlane.f32.xlu0 %v163_v20 }
 0x224   :  { %v165_v21 = vpop.xlane.xlu0 %164 }
 0x225   :  { %v166_v22 = vrot.slane %v165_v21, 4 }
 0x227   :  { %v167_v23 = vadd.f32 %v166_v22, %v165_v21 }
 0x229   :  { %v168_v24 = vrot.slane %v167_v23, 2 }
 0x22b   :  { %v169_v25 = vadd.f32 %v168_v24, %v167_v23 }
 0x22d   :  { %v170_v26 = vrot.slane %v169_v25, 1 }
 0x22f   :  { %v171_v27 = vadd.f32 %v170_v26, %v169_v25 }
 0x231   :  { %209 = vpush %v171_v27 }
 0x262   :  { %s210_s6 = spop %209 }
 0x263   :  { %s173_s8 = ssub.f32 0.0, %s210_s6 }
 0x265   :  { %s174_s11 = smul.f32 0.020833334, %s173_s8 }
 0x267   :  { %176 = sst [smem:[#allocation10]] %s174_s11 }
 0x268   :  { %337 = shalt.err (!%p334_p6)
}
 0x269   :  { %s350_s30 = smov [#allocation10]  }
 0x26a   :  { %196 = dma.smem_to_hbm %s350_s30, 16, %s475_s7, [#allocation4]  }
 0x26b   :  { %344 = dma.done.wait [#allocation4], 16  }
 0x26c   :  { %345 = vsyncadd [#allocation4], 4294967280 }
 0x26d   :  { %204 = sfence }
 0x26e   :  { %205 = vsyncpa [#allocation3], 1 }
 0x26f   :  { %206 = vsyncpa [#allocation6], 1 }
 0x270   :  { %207 = vsyncpa [#allocation9], 1 }
 0x271   :  { %208 = vsyncpa [#allocation4], 1 }

</bundles_post_ra>
